<compile_context>
chip_gen: v6e
topology: v6e:2x2x1
jax: 0.10.0
libtpu: 0.0.40
codegen_flags: <defaults>
</compile_context>

<pallas_src>
import functools

import jax
import jax.numpy as jnp
from jax.experimental import pallas as pl
from jax.experimental.pallas import tpu as pltpu


def _attention_reference_kernel(psd_ref, w_ref, b_ref, gw_ref, gb_ref, u_ref,
                                *, scaling: float):
    # psd_ref block: (1, 2, C, C, F); [0, 0] = real, [0, 1] = imag,
    # with layout [c, e, f] = psd_in[b, f, c, e].{real, imag}; F on lanes.
    pr = psd_ref[0, 0]                                                    # (C, C, F)
    pi = psd_ref[0, 1]
    C = pr.shape[0]
    inv_cm1 = 1.0 / (C - 1)

    # Off-diagonal mean over e: row-sum minus diagonal (static, unrolled slices).
    rowsum_r = jnp.sum(pr, axis=1)                                        # (C, F)
    rowsum_i = jnp.sum(pi, axis=1)
    diag_r = jnp.concatenate([pr[c, c:c + 1, :] for c in range(C)], 0)    # (C, F)
    diag_i = jnp.concatenate([pi[c, c:c + 1, :] for c in range(C)], 0)
    fr = (rowsum_r - diag_r) * inv_cm1
    fi = (rowsum_i - diag_i) * inv_cm1
    feat = jnp.sqrt(fr * fr + fi * fi)                                    # (C, F)

    # mlp_psd: Linear(F -> A) + tanh (MXU dot, f32 accumulate).
    h = jnp.tanh(jnp.dot(feat, w_ref[...], preferred_element_type=jnp.float32)
                 + b_ref[...])                                            # (C, A)

    # gvec: Linear(A -> 1), scaling, softmax over channels.
    e = jnp.sum(h * gw_ref[...], axis=-1, keepdims=True) + gb_ref[...]    # (C, 1)
    e = scaling * e
    e = e - jnp.max(e, axis=0, keepdims=True)
    p = jnp.exp(e)
    u_ref[0] = p * pl.reciprocal(jnp.sum(p, axis=0, keepdims=True), approx=True)


def attention_reference(psd_in, ilens, mlp_w, mlp_b, gvec_w, gvec_b, scaling=2.0):
    """psd_in: complex (B, F, C, C); returns (u (B, C) float32, ilens)."""
    B, F, C, C2 = psd_in.shape
    assert C == C2, psd_in.shape
    A = mlp_w.shape[1]

    # Layout plumbing in the wrapper (XLA): (B, F, C, C) -> (B, 2, C, C, F), real/imag stacked.
    p = jnp.transpose(psd_in, (0, 2, 3, 1))                               # (B, C, C, F)
    psd_ri = jnp.stack([jnp.real(p).astype(jnp.float32),
                        jnp.imag(p).astype(jnp.float32)], axis=1)         # (B, 2, C, C, F)

    psd_spec = pl.BlockSpec((1, 2, C, C, F), lambda b: (b, 0, 0, 0, 0))
    w_spec = pl.BlockSpec((F, A), lambda b: (0, 0))
    b_spec = pl.BlockSpec((1, A), lambda b: (0, 0))
    gw_spec = pl.BlockSpec((1, A), lambda b: (0, 0))
    gb_spec = pl.BlockSpec((1, 1), lambda b: (0, 0))

    u = pl.pallas_call(
        functools.partial(_attention_reference_kernel, scaling=float(scaling)),
        out_shape=jax.ShapeDtypeStruct((B, C, 1), jnp.float32),
        grid=(B,),
        in_specs=[psd_spec, w_spec, b_spec, gw_spec, gb_spec],
        out_specs=pl.BlockSpec((1, C, 1), lambda b: (b, 0, 0)),
        compiler_params=pltpu.CompilerParams(dimension_semantics=("parallel",)),
    )(psd_ri, mlp_w, mlp_b, gvec_w, gvec_b)
    return u[:, :, 0], ilens


# Pure-JAX reference (same math as the torch module) for a correctness check.
def _reference(psd, w, b, gw, gb, scaling=2.0):
    Bx, Fx, Cx, _ = psd.shape
    mask = (1.0 - jnp.eye(Cx, dtype=jnp.float32)).astype(psd.dtype)
    s = jnp.sum(psd * mask, axis=-1) / (Cx - 1)            # (B, F, C)
    feat = jnp.abs(jnp.swapaxes(s, -1, -2))                # (B, C, F)
    h = jnp.tanh(feat @ w + b)                             # (B, C, A)
    e = jnp.sum(h * gw, axis=-1) + gb[0, 0]                # (B, C)
    return jax.nn.softmax(scaling * e, axis=-1)


if __name__ == "__main__":
    B, T, C, F = 2, 8, 4, 16     # batch, frames, channels, freq bins (bidim = F)
    A = 8                        # att_dim

    key = jax.random.PRNGKey(0)
    k = jax.random.split(key, 4)

    # Build a Hermitian PSD-like input: psd[b,f,c,e] = sum_t x[b,f,c,t] * conj(x[b,f,e,t])
    xr = jax.random.normal(k[0], (B, F, C, T), jnp.float32)
    xi = jax.random.normal(k[1], (B, F, C, T), jnp.float32)
    x = (xr + 1j * xi).astype(jnp.complex64)
    psd_in = jnp.einsum('bfct,bfet->bfce', x, jnp.conj(x))   # (B, F, C, C) complex64
    ilens = jnp.full((B,), T, dtype=jnp.int32)

    mlp_w = 0.3 * jax.random.normal(k[2], (F, A), jnp.float32)   # Linear(F, A).weight.T
    mlp_b = jnp.zeros((1, A), jnp.float32)
    gvec_w = 0.3 * jax.random.normal(k[3], (1, A), jnp.float32)  # Linear(A, 1).weight
    gvec_b = jnp.zeros((1, 1), jnp.float32)

    fwd = jax.jit(functools.partial(attention_reference, scaling=2.0))
    u, ilens_out = fwd(psd_in, ilens, mlp_w, mlp_b, gvec_w, gvec_b)
    jax.block_until_ready(u)

    u_ref = _reference(psd_in, mlp_w, mlp_b, gvec_w, gvec_b, scaling=2.0)

    assert u.shape == (B, C) and ilens_out.shape == (B,)
    assert bool(jnp.all(jnp.isfinite(u)))
    # loose tolerance: softmax normalizer uses the approximate EUP reciprocal
    assert bool(jnp.allclose(u, u_ref, rtol=1e-2, atol=5e-3)), \
        f"max abs diff {float(jnp.max(jnp.abs(u - u_ref)))}"
    print("KERNEL_OK")
</pallas_src>

<mosaic_0001>
module attributes {stable_mosaic.version = 11 : i64} {
  func.func @_attention_reference_kernel(%arg0: i32, %arg1: memref<1x2x4x4x16xf32, #tpu.memory_space<vmem>>, %arg2: memref<16x8xf32, #tpu.memory_space<vmem>>, %arg3: memref<1x8xf32, #tpu.memory_space<vmem>>, %arg4: memref<1x8xf32, #tpu.memory_space<vmem>>, %arg5: memref<1x1xf32, #tpu.memory_space<vmem>>, %arg6: memref<1x4x1xf32, #tpu.memory_space<vmem>>) attributes {dimension_semantics = [#tpu.dimension_semantics<parallel>], iteration_bounds = array<i64: 2>, scalar_prefetch = 0 : i64, scratch_operands = 0 : i64, tpu.core_type = #tpu.core_type<tc>, window_params = [{transform_indices = @transform_0, window_bounds = array<i64: 1, 2, 4, 4, 16>}, {pipeline_mode = #tpu.pipeline_mode<synchronous>, transform_indices = @transform_1, window_bounds = array<i64: 16, 8>}, {pipeline_mode = #tpu.pipeline_mode<synchronous>, transform_indices = @transform_2, window_bounds = array<i64: 1, 8>}, {pipeline_mode = #tpu.pipeline_mode<synchronous>, transform_indices = @transform_3, window_bounds = array<i64: 1, 8>}, {pipeline_mode = #tpu.pipeline_mode<synchronous>, transform_indices = @transform_4, window_bounds = array<i64: 1, 1>}, {transform_indices = @transform_5, window_bounds = array<i64: 1, 4, 1>}]} {
    %c0 = arith.constant 0 : index
    %c0_0 = arith.constant 0 : index
    %c0_1 = arith.constant 0 : index
    %c0_2 = arith.constant 0 : index
    %c0_3 = arith.constant 0 : index
    %0 = vector.load %arg1[%c0, %c0_0, %c0_1, %c0_2, %c0_3] : memref<1x2x4x4x16xf32, #tpu.memory_space<vmem>>, vector<1x1x4x4x16xf32>
    %1 = vector.shape_cast %0 : vector<1x1x4x4x16xf32> to vector<4x4x16xf32>
    %c0_4 = arith.constant 0 : index
    %c1 = arith.constant 1 : index
    %c0_5 = arith.constant 0 : index
    %c0_6 = arith.constant 0 : index
    %c0_7 = arith.constant 0 : index
    %2 = vector.load %arg1[%c0_4, %c1, %c0_5, %c0_6, %c0_7] : memref<1x2x4x4x16xf32, #tpu.memory_space<vmem>>, vector<1x1x4x4x16xf32>
    %3 = vector.shape_cast %2 : vector<1x1x4x4x16xf32> to vector<4x4x16xf32>
    %cst = arith.constant dense<0.000000e+00> : vector<4x16xf32>
    %4 = vector.multi_reduction <add>, %1, %cst [1] : vector<4x4x16xf32> to vector<4x16xf32>
    %cst_8 = arith.constant dense<0.000000e+00> : vector<4x16xf32>
    %5 = vector.multi_reduction <add>, %3, %cst_8 [1] : vector<4x4x16xf32> to vector<4x16xf32>
    %6 = vector.extract_strided_slice %1 {offsets = [0, 0, 0], sizes = [1, 1, 16], strides = [1, 1, 1]} : vector<4x4x16xf32> to vector<1x1x16xf32>
    %7 = vector.shape_cast %6 : vector<1x1x16xf32> to vector<1x16xf32>
    %8 = vector.extract_strided_slice %1 {offsets = [1, 1, 0], sizes = [1, 1, 16], strides = [1, 1, 1]} : vector<4x4x16xf32> to vector<1x1x16xf32>
    %9 = vector.shape_cast %8 : vector<1x1x16xf32> to vector<1x16xf32>
    %10 = vector.extract_strided_slice %1 {offsets = [2, 2, 0], sizes = [1, 1, 16], strides = [1, 1, 1]} : vector<4x4x16xf32> to vector<1x1x16xf32>
    %11 = vector.shape_cast %10 : vector<1x1x16xf32> to vector<1x16xf32>
    %12 = vector.extract_strided_slice %1 {offsets = [3, 3, 0], sizes = [1, 1, 16], strides = [1, 1, 1]} : vector<4x4x16xf32> to vector<1x1x16xf32>
    %13 = vector.shape_cast %12 : vector<1x1x16xf32> to vector<1x16xf32>
    %14 = tpu.concatenate %7, %9, %11, %13 in 0 : vector<1x16xf32>, vector<1x16xf32>, vector<1x16xf32>, vector<1x16xf32> -> vector<4x16xf32>
    %15 = vector.extract_strided_slice %3 {offsets = [0, 0, 0], sizes = [1, 1, 16], strides = [1, 1, 1]} : vector<4x4x16xf32> to vector<1x1x16xf32>
    %16 = vector.shape_cast %15 : vector<1x1x16xf32> to vector<1x16xf32>
    %17 = vector.extract_strided_slice %3 {offsets = [1, 1, 0], sizes = [1, 1, 16], strides = [1, 1, 1]} : vector<4x4x16xf32> to vector<1x1x16xf32>
    %18 = vector.shape_cast %17 : vector<1x1x16xf32> to vector<1x16xf32>
    %19 = vector.extract_strided_slice %3 {offsets = [2, 2, 0], sizes = [1, 1, 16], strides = [1, 1, 1]} : vector<4x4x16xf32> to vector<1x1x16xf32>
    %20 = vector.shape_cast %19 : vector<1x1x16xf32> to vector<1x16xf32>
    %21 = vector.extract_strided_slice %3 {offsets = [3, 3, 0], sizes = [1, 1, 16], strides = [1, 1, 1]} : vector<4x4x16xf32> to vector<1x1x16xf32>
    %22 = vector.shape_cast %21 : vector<1x1x16xf32> to vector<1x16xf32>
    %23 = tpu.concatenate %16, %18, %20, %22 in 0 : vector<1x16xf32>, vector<1x16xf32>, vector<1x16xf32>, vector<1x16xf32> -> vector<4x16xf32>
    %24 = arith.subf %4, %14 : vector<4x16xf32>
    %cst_9 = arith.constant 0.333333343 : f32
    %25 = vector.broadcast %cst_9 : f32 to vector<4x16xf32>
    %26 = arith.mulf %24, %25 : vector<4x16xf32>
    %27 = arith.subf %5, %23 : vector<4x16xf32>
    %cst_10 = arith.constant 0.333333343 : f32
    %28 = vector.broadcast %cst_10 : f32 to vector<4x16xf32>
    %29 = arith.mulf %27, %28 : vector<4x16xf32>
    %30 = arith.mulf %26, %26 : vector<4x16xf32>
    %31 = arith.mulf %29, %29 : vector<4x16xf32>
    %32 = arith.addf %30, %31 : vector<4x16xf32>
    %33 = math.sqrt %32 : vector<4x16xf32>
    %c0_11 = arith.constant 0 : index
    %c0_12 = arith.constant 0 : index
    %34 = vector.load %arg2[%c0_11, %c0_12] : memref<16x8xf32, #tpu.memory_space<vmem>>, vector<16x8xf32>
    %cst_13 = arith.constant dense<0.000000e+00> : vector<4x8xf32>
    %35 = tpu.matmul %33, %34, %cst_13 {dimension_numbers = #tpu.dot_dimension_numbers<[1], [0], [0], [1], [0, 0, 1, 1], [], []>} : vector<4x16xf32>, vector<16x8xf32>, vector<4x8xf32> -> vector<4x8xf32>
    %c0_14 = arith.constant 0 : index
    %c0_15 = arith.constant 0 : index
    %36 = vector.load %arg3[%c0_14, %c0_15] : memref<1x8xf32, #tpu.memory_space<vmem>>, vector<1x8xf32>
    %37 = vector.broadcast %36 : vector<1x8xf32> to vector<4x8xf32>
    %38 = arith.addf %35, %37 : vector<4x8xf32>
    %39 = math.tanh %38 : vector<4x8xf32>
    %c0_16 = arith.constant 0 : index
    %c0_17 = arith.constant 0 : index
    %40 = vector.load %arg4[%c0_16, %c0_17] : memref<1x8xf32, #tpu.memory_space<vmem>>, vector<1x8xf32>
    %41 = vector.broadcast %40 : vector<1x8xf32> to vector<4x8xf32>
    %42 = arith.mulf %39, %41 : vector<4x8xf32>
    %cst_18 = arith.constant dense<0.000000e+00> : vector<4xf32>
    %43 = vector.multi_reduction <add>, %42, %cst_18 [1] : vector<4x8xf32> to vector<4xf32>
    %44 = vector.shape_cast %43 : vector<4xf32> to vector<4x1xf32>
    %c0_19 = arith.constant 0 : index
    %c0_20 = arith.constant 0 : index
    %45 = vector.load %arg5[%c0_19, %c0_20] : memref<1x1xf32, #tpu.memory_space<vmem>>, vector<1x1xf32>
    %46 = vector.broadcast %45 : vector<1x1xf32> to vector<4x1xf32>
    %47 = arith.addf %44, %46 : vector<4x1xf32>
    %cst_21 = arith.constant 2.000000e+00 : f32
    %48 = vector.broadcast %cst_21 : f32 to vector<4x1xf32>
    %49 = arith.mulf %48, %47 : vector<4x1xf32>
    %cst_22 = arith.constant dense<0xFF800000> : vector<1xf32>
    %50 = vector.multi_reduction <maximumf>, %49, %cst_22 [0] : vector<4x1xf32> to vector<1xf32>
    %51 = vector.shape_cast %50 : vector<1xf32> to vector<1x1xf32>
    %52 = vector.broadcast %51 : vector<1x1xf32> to vector<4x1xf32>
    %53 = arith.subf %49, %52 : vector<4x1xf32>
    %54 = math.exp %53 : vector<4x1xf32>
    %cst_23 = arith.constant dense<0.000000e+00> : vector<1xf32>
    %55 = vector.multi_reduction <add>, %54, %cst_23 [0] : vector<4x1xf32> to vector<1xf32>
    %56 = vector.shape_cast %55 : vector<1xf32> to vector<1x1xf32>
    %57 = tpu.reciprocal %56 {approx = true} : vector<1x1xf32> -> vector<1x1xf32>
    %58 = vector.broadcast %57 : vector<1x1xf32> to vector<4x1xf32>
    %59 = arith.mulf %54, %58 : vector<4x1xf32>
    %c0_24 = arith.constant 0 : index
    %c0_25 = arith.constant 0 : index
    %c0_26 = arith.constant 0 : index
    %60 = vector.load %arg6[%c0_24, %c0_25, %c0_26] : memref<1x4x1xf32, #tpu.memory_space<vmem>>, vector<1x4x1xf32>
    %61 = vector.shape_cast %60 : vector<1x4x1xf32> to vector<4x1xf32>
    %62 = vector.shape_cast %59 : vector<4x1xf32> to vector<1x4x1xf32>
    tpu.vector_store %arg6[%c0_24, %c0_25, %c0_26], %62 {strides = array<i32>} : memref<1x4x1xf32, #tpu.memory_space<vmem>>, vector<1x4x1xf32>,
    return
  }
  func.func @transform_0(%arg0: i32) -> (i32, i32, i32, i32, i32) {
    %c0_i32 = arith.constant 0 : i32
    %c0_i32_0 = arith.constant 0 : i32
    %c0_i32_1 = arith.constant 0 : i32
    %c0_i32_2 = arith.constant 0 : i32
    %c0_i32_3 = arith.constant 0 : i32
    return %arg0, %c0_i32, %c0_i32_0, %c0_i32_1, %c0_i32_2 : i32, i32, i32, i32, i32
  }
  func.func @transform_1(%arg0: i32) -> (i32, i32) {
    %c0_i32 = arith.constant 0 : i32
    %c0_i32_0 = arith.constant 0 : i32
    %c0_i32_1 = arith.constant 0 : i32
    return %c0_i32, %c0_i32_0 : i32, i32
  }
  func.func @transform_2(%arg0: i32) -> (i32, i32) {
    %c0_i32 = arith.constant 0 : i32
    %c0_i32_0 = arith.constant 0 : i32
    %c0_i32_1 = arith.constant 0 : i32
    return %c0_i32, %c0_i32_0 : i32, i32
  }
  func.func @transform_3(%arg0: i32) -> (i32, i32) {
    %c0_i32 = arith.constant 0 : i32
    %c0_i32_0 = arith.constant 0 : i32
    %c0_i32_1 = arith.constant 0 : i32
    return %c0_i32, %c0_i32_0 : i32, i32
  }
  func.func @transform_4(%arg0: i32) -> (i32, i32) {
    %c0_i32 = arith.constant 0 : i32
    %c0_i32_0 = arith.constant 0 : i32
    %c0_i32_1 = arith.constant 0 : i32
    return %c0_i32, %c0_i32_0 : i32, i32
  }
  func.func @transform_5(%arg0: i32) -> (i32, i32, i32) {
    %c0_i32 = arith.constant 0 : i32
    %c0_i32_0 = arith.constant 0 : i32
    %c0_i32_1 = arith.constant 0 : i32
    return %arg0, %c0_i32, %c0_i32_0 : i32, i32, i32
  }
}

</mosaic_0001>

<bundles_post_ra>
// kernel: custom-call.1
= control target key start
LH: loop header
LB: loop body
LE: loop exit
PB: predicated region body
PF: predicated region fallthrough
CT: control target
= control target key end

     0   :  { %s51_s0 = inlined_call_operand.hbm [shape: c64[2,16,4,4], index: 0, kind: input, shape index: {}]   ;;  %s52_s1 = inlined_call_operand.vmem [shape: f32[2,16,4,4], index: 1, kind: output, shape index: {}]  }
   0x1   :  { %s2_s8 = scalar_lea.hbm %s51_s0, 512 }
   0x2   :  { %3 = vsyncpa [#allocation0], 0  ;;  %s4_s11 = sshll.u32 %s52_s1, 4  ;;  %s5_s11 = int_to_ptr.vmem [resolvable:$true] %s4_s11 }
   0x3   :  { %s20_s12 = scalar_lea.vmem %s5_s11, 512  ;;  %p25_p1 = scmp.lt.s32.totalorder %s5_s11, %s5_s11 }
   0x4   :  { %p21_p0 = scmp.ne.s32.totalorder %s5_s11, %s20_s12  ;;  %p26_p2 = scmp.lt.s32.totalorder %s20_s12, %s20_s12 }
   0x6   :  { %p27_p3 = por %p26_p2, %p25_p1 }
   0x8   :  { %p28_p4 = pnand %p27_p3, %p21_p0 }
   0xa   :  { %31 = shalt.err (!%p28_p4)  }
   0xb   :  { %7 = dma.hbm_to_vmem [thread:$0]  %s2_s8, 512, %s5_s11, [#allocation0] }
   0xc   :  { %33 = dma.done.wait [#allocation0], 512  }
   0xd   :  { %34 = vsyncadd [#allocation0], 4294966784 }
   0xe   :  { %9 = vsyncpa [#allocation0], 1 }

// kernel: custom-call
= control target key start
LH: loop header
LB: loop body
LE: loop exit
PB: predicated region body
PF: predicated region fallthrough
CT: control target
= control target key end

     0   :  { %2 = vsyncpa [#allocation0], 0  ;;  %s47_s0 = inlined_call_operand.hbm [shape: c64[2,16,4,4], index: 0, kind: input, shape index: {}]   ;;  %s48_s1 = inlined_call_operand.vmem [shape: f32[2,16,4,4], index: 1, kind: output, shape index: {}]  }
   0x1   :  { %s3_s8 = sshll.u32 %s48_s1, 4  ;;  %s4_s8 = int_to_ptr.vmem [resolvable:$true] %s3_s8 }
   0x2   :  { %s17_s9 = scalar_lea.vmem %s4_s8, 512  ;;  %p22_p1 = scmp.lt.s32.totalorder %s4_s8, %s4_s8 }
   0x3   :  { %p18_p0 = scmp.ne.s32.totalorder %s4_s8, %s17_s9  ;;  %p23_p2 = scmp.lt.s32.totalorder %s17_s9, %s17_s9 }
   0x5   :  { %p24_p3 = por %p23_p2, %p22_p1 }
   0x7   :  { %p25_p4 = pnand %p24_p3, %p18_p0 }
   0x9   :  { %28 = shalt.err (!%p25_p4)  }
   0xa   :  { %6 = dma.hbm_to_vmem [thread:$0]  %s47_s0, 512, %s4_s8, [#allocation0] }
   0xb   :  { %29 = dma.done.wait [#allocation0], 512  }
   0xc   :  { %30 = vsyncadd [#allocation0], 4294966784 }
   0xd   :  { %8 = vsyncpa [#allocation0], 1 }

// kernel: attention_reference.1
= control target key start
LH: loop header
LB: loop body
LE: loop exit
PB: predicated region body
PF: predicated region fallthrough
CT: control target
= control target key end

     0   :  { %s659_s20 = smov 0   ;;  %s709_s0 = inlined_call_operand.vmem [shape: f32[2,2,4,4,16], index: 0, kind: input, shape index: {}]   ;;  %s710_s1 = inlined_call_operand.vmem [shape: f32[16,8], index: 1, kind: input, shape index: {}]   ;;  %s711_s2 = inlined_call_operand.vmem [shape: f32[1,8], index: 2, kind: input, shape index: {}]   ;;  %s712_s3 = inlined_call_operand.vmem [shape: f32[1,8], index: 3, kind: input, shape index: {}]   ;;  %s713_s4 = inlined_call_operand.<no memory space> [shape: f32[1,1], index: 4, kind: input, shape index: {}]   ;;  %s714_s5 = inlined_call_operand.vmem [shape: f32[2,4,1], index: 5, kind: output, shape index: {}]  }
   0x1   :  { %v10_v0 = vstv %s713_s4 }
   0x2   :  { %11 = vst [vmem:[#allocation2] sm:$0x1] %v10_v0 }
   0x3 LB: > { %s563_s21 = sadd.s32 4294967295, %s622_s20   ;;  %p567_p0 = scmp.ge.s32.totalorder %s622_s20, 1  ;;  %s622_s20 = sphi %s659_s20, %s17_s20  }
   0x4   : > { %p189_p1 = scmp.lt.s32.totalorder %s622_s20, 3 }
   0x6   : > { %p190_p2 = pnand %p567_p0, %p189_p1 }
   0x7   : > { %p216_p3 = scmp.lt.s32.totalorder (!%p190_p2), %s563_s21, 1 }
   0x8   : > { %193 = sbr.rel (%p190_p2) target bundleno = 483 (0x1e3), region = 40 }
   0xd   : > { %v373_v1 = vld [vmem:[%s710_s1 + $0x8] sm:$0xff]  ;;  %v624_v2 = vmov 0.0   ;;  %v372_v3 = vld [vmem:[%s710_s1] sm:$0xff]  ;;  %vm625_vm0 = vmmov 0   ;;  %s716_s21 = smov (!%p216_p3, %s563_s21), 1  ;;  %vm291_vm1 = vcmask 1040384  }
   0xe   : > { %585 = vmatprep.subr.mxu0 %v624_v2  ;;  %589 = vmatprep.mubr.msk.f32.mxu0 %vm625_vm0, %v624_v2  ;;  %s581_s25 = sshll.u32 %s716_s21, 5  ;;  %vm234_vm2 = vcmask 125952   ;;  %vm293_vm3 = vcmask 1041408   ;;  %vm295_vm4 = vcmask 1042432   ;;  %vm386_vm13 = vcmask 1041409   ;;  %s570_s8 = sshll.u32 %s716_s21, 2 }
   0xf   : > { %586 = vmatpush3.msra.mxu0 %v373_v1  ;;  %s220_s28 = scalar_lea.vmem %s709_s0, %s581_s25  ;;  %vm389_vm14 = vcmask 1042434   ;;  %vm392_vm15 = vcmask 1043459   ;;  %vm394_vm0 = vcmask 130048   ;;  %s224_s11 = scalar_lea.vmem %s714_s5, %s570_s8 }
  0x10   : > { %587 = vmatprep.subr.mxu0 %v624_v2  ;;  %v225_v4 = vld [vmem:[%s220_s28] sm:$0xf]  ;;  %v226_v5 = vld [vmem:[%s220_s28 + $0x4] sm:$0xf]  ;;  %v227_v6 = vld [vmem:[%s220_s28 + $0x8] sm:$0xf] }
  0x11   : > { %588 = vmatpush3.msra.mxu0 %v372_v3  ;;  %v228_v7 = vld [vmem:[%s220_s28 + $0xc] sm:$0xf]  ;;  %v571_v8 = vld [vmem:[%s220_s28 + $0x10] sm:$0xf]  ;;  %v572_v9 = vld [vmem:[%s220_s28 + $0x14] sm:$0xf]  ;;  %v292_v10 = vsel %vm291_vm1, %v225_v4, %v226_v5 }
  0x12   : > { %v573_v11 = vld [vmem:[%s220_s28 + $0x18] sm:$0xf]  ;;  %v235_v12 = vsel %vm234_vm2, %v225_v4, 0.0  ;;  %v242_v13 = vsel %vm234_vm2, %v226_v5, 0.0  ;;  %v294_v14 = vsel %vm293_vm3, %v292_v10, %v227_v6  ;;  %v297_v15 = vsel %vm291_vm1, %v571_v8, %v572_v9  ;;  %v574_v16 = vld [vmem:[%s220_s28 + $0x1c] sm:$0xf] }
  0x13   : > { %v236_v17 = vrot.slane %v235_v12, 4  ;;  %v243_v18 = vrot.slane %v242_v13, 4  ;;  %v249_v19 = vsel %vm234_vm2, %v227_v6, 0.0  ;;  %v256_v20 = vsel %vm234_vm2, %v228_v7, 0.0 }
  0x14   : > { %v250_v21 = vrot.slane %v249_v19, 4  ;;  %v257_v22 = vrot.slane %v256_v20, 4  ;;  %v263_v23 = vsel %vm234_vm2, %v571_v8, 0.0  ;;  %v270_v24 = vsel %vm234_vm2, %v572_v9, 0.0 }
  0x15   : > { %v237_v25 = vadd.f32 %v236_v17, %v235_v12  ;;  %v244_v26 = vadd.f32 %v243_v18, %v242_v13  ;;  %v264_v27 = vrot.slane %v263_v23, 4  ;;  %v271_v28 = vrot.slane %v270_v24, 4 }
  0x16   : > { %v251_v29 = vadd.f32 %v250_v21, %v249_v19  ;;  %v258_v30 = vadd.f32 %v257_v22, %v256_v20  ;;  %v277_v31 = vsel %vm234_vm2, %v573_v11, 0.0  ;;  %v284_v32 = vsel %vm234_vm2, %v574_v16, 0.0 }
  0x17   : > { %v238_v33 = vrot.slane %v237_v25, 2  ;;  %v245_v34 = vrot.slane %v244_v26, 2  ;;  %v265_v35 = vadd.f32 %v264_v27, %v263_v23  ;;  %v272_v36 = vadd.f32 %v271_v28, %v270_v24 }
  0x18   : > { %v252_v37 = vrot.slane %v251_v29, 2  ;;  %v259_v38 = vrot.slane %v258_v30, 2  ;;  %v278_v39 = vrot.slane %v277_v31, 4  ;;  %v285_v40 = vrot.slane %v284_v32, 4 }
  0x19   : > { %v239_v41 = vadd.f32 %v238_v33, %v237_v25  ;;  %v246_v42 = vadd.f32 %v245_v34, %v244_v26  ;;  %v266_v43 = vrot.slane %v265_v35, 2  ;;  %v273_v44 = vrot.slane %v272_v36, 2 }
  0x1a   : > { %v253_v45 = vadd.f32 %v252_v37, %v251_v29  ;;  %v260_v46 = vadd.f32 %v259_v38, %v258_v30  ;;  %v279_v47 = vadd.f32 %v278_v39, %v277_v31  ;;  %v286_v48 = vadd.f32 %v285_v40, %v284_v32 }
  0x1b   : > { %v240_v49 = vrot.slane %v239_v41, 1  ;;  %v247_v50 = vrot.slane %v246_v42, 1  ;;  %v267_v51 = vadd.f32 %v266_v43, %v265_v35  ;;  %v274_v52 = vadd.f32 %v273_v44, %v272_v36 }
  0x1c   : > { %v254_v53 = vrot.slane %v253_v45, 1  ;;  %v261_v54 = vrot.slane %v260_v46, 1  ;;  %v280_v55 = vrot.slane %v279_v47, 2  ;;  %v287_v56 = vrot.slane %v286_v48, 2 }
  0x1d   : > { %v241_v57 = vadd.f32 %v240_v49, %v239_v41  ;;  %v248_v58 = vadd.f32 %v247_v50, %v246_v42  ;;  %v268_v59 = vrot.slane %v267_v51, 1  ;;  %v275_v60 = vrot.slane %v274_v52, 1 }
  0x1e   : > { %v255_v61 = vadd.f32 %v254_v53, %v253_v45  ;;  %v262_v62 = vadd.f32 %v261_v54, %v260_v46  ;;  %v281_v63 = vadd.f32 %v280_v55, %v279_v47  ;;  %v288_v0 = vadd.f32 %v287_v56, %v286_v48 }
  0x1f   : > { %v269_v1 = vadd.f32 %v268_v59, %v267_v51  ;;  %v276_v2 = vadd.f32 %v275_v60, %v274_v52  ;;  %v296_v3 = vsel %vm295_vm4, %v294_v14, %v228_v7  ;;  %v298_v4 = vsel %vm293_vm3, %v297_v15, %v573_v11 }
  0x20   : > { %v282_v5 = vrot.slane %v281_v63, 1  ;;  %v289_v6 = vrot.slane %v288_v0, 1  ;;  %v299_v8 = vsel %vm295_vm4, %v298_v4, %v574_v16  ;;  %v301_v9 = vrot.slane %v296_v3, 1 }
  0x21   : > { %v302_v10 = vrot.slane %v296_v3, 2  ;;  %v303_v12 = vrot.slane %v296_v3, 3  ;;  %v308_v13 = vsub.f32 %v241_v57, %v296_v3  ;;  %v317_v17 = vrot.slane %v299_v8, 1 }
  0x22   : > { %v283_v18 = vadd.f32 %v282_v5, %v281_v63  ;;  %v290_v19 = vadd.f32 %v289_v6, %v288_v0  ;;  %v309_v20 = vsub.f32 %v248_v58, %v301_v9  ;;  %v318_v21 = vrot.slane %v299_v8, 2  ;;  %v575_v6 = vld [vmem:[%s711_s2] ss:$0 sm:$0xff] }
  0x23   : > { %v310_v22 = vsub.f32 %v255_v61, %v302_v10  ;;  %v311_v23 = vsub.f32 %v262_v62, %v303_v12  ;;  %v312_v24 = vmul.f32 0.33333334, %v308_v13  ;;  %v319_v25 = vrot.slane %v299_v8, 3  ;;  %v577_v12 = vld [vmem:[%s712_s3] ss:$0 sm:$0xff] }
  0x24   : > { %v313_v7 = vmul.f32 0.33333334, %v309_v20  ;;  %v324_v14 = vsub.f32 %v269_v1, %v299_v8  ;;  %v325_v11 = vsub.f32 %v276_v2, %v317_v17  ;;  %v326_v15 = vsub.f32 %v283_v18, %v318_v21 }
  0x25   : > { %v314_v26 = vmul.f32 0.33333334, %v310_v22  ;;  %v315_v27 = vmul.f32 0.33333334, %v311_v23  ;;  %v327_v16 = vsub.f32 %v290_v19, %v319_v25  ;;  %v332_v28 = vmul.f32 %v312_v24, %v312_v24  ;;  %v578_v19 = vld [vmem:[#allocation2] ss:$0 sm:$0xff] }
  0x26   : > { %v328_v29 = vmul.f32 0.33333334, %v324_v14  ;;  %v329_v30 = vmul.f32 0.33333334, %v325_v11  ;;  %v330_v31 = vmul.f32 0.33333334, %v326_v15  ;;  %v333_v32 = vmul.f32 %v313_v7, %v313_v7 }
  0x27   : > { %v331_v33 = vmul.f32 0.33333334, %v327_v16  ;;  %v334_v34 = vmul.f32 %v314_v26, %v314_v26  ;;  %v335_v35 = vmul.f32 %v315_v27, %v315_v27  ;;  %vm476_vm1 = vcmask 60416  }
  0x28   : > { %v336_v36 = vmul.f32 %v328_v29, %v328_v29  ;;  %v337_v37 = vmul.f32 %v329_v30, %v329_v30  ;;  %v338_v38 = vmul.f32 %v330_v31, %v330_v31  ;;  %vm489_vm2 = vcmask 3072  }
  0x29   : > { %v339_v39 = vmul.f32 %v331_v33, %v331_v33 }
  0x2a   : > { %v340_v40 = vadd.f32 %v336_v36, %v332_v28  ;;  %v341_v41 = vadd.f32 %v337_v37, %v333_v32  ;;  %v342_v42 = vadd.f32 %v338_v38, %v334_v34 }
  0x2b   : > { %v343_v43 = vadd.f32 %v339_v39, %v335_v35 }
  0x2c   : > { %602 = vrsqrt.f32 %v340_v40  ;;  %vm346_vm5 = vcmp.eq.f32.partialorder %v340_v40, inf  ;;  %vm348_vm6 = vcmp.eq.f32.partialorder %v340_v40, 0.0  ;;  %v349_v45 = vand.u32 2147483648, %v340_v40 }
  0x2d   : > { %604 = vrsqrt.f32 %v341_v41  ;;  %vm353_vm7 = vcmp.eq.f32.partialorder %v341_v41, inf  ;;  %vm355_vm8 = vcmp.eq.f32.partialorder %v341_v41, 0.0  ;;  %v356_v48 = vand.u32 2147483648, %v341_v41 }
  0x2e   : > { %606 = vrsqrt.f32 %v342_v42  ;;  %vm360_vm9 = vcmp.eq.f32.partialorder %v342_v42, inf  ;;  %vm362_vm10 = vcmp.eq.f32.partialorder %v342_v42, 0.0  ;;  %v363_v51 = vand.u32 2147483648, %v342_v42 }
  0x2f   : > { %608 = vrsqrt.f32 %v343_v43  ;;  %vm367_vm11 = vcmp.eq.f32.partialorder %v343_v43, inf  ;;  %v370_v55 = vand.u32 2147483648, %v343_v43  ;;  %vm369_vm12 = vcmp.eq.f32.partialorder %v343_v43, 0.0 }
  0x39   : > { %v603_v44 = vpop.eup %602 }
  0x3a   : > { %v605_v46 = vpop.eup %604  ;;  %v345_v47 = vmul.f32 %v603_v44, %v340_v40 }
  0x3b   : > { %v607_v49 = vpop.eup %606  ;;  %v352_v50 = vmul.f32 %v605_v46, %v341_v41 }
  0x3c   : > { %v609_v52 = vpop.eup %608  ;;  %v347_v53 = vsel %vm346_vm5, %v340_v40, %v345_v47  ;;  %v359_v54 = vmul.f32 %v607_v49, %v342_v42 }
  0x3d   : > { %v354_v56 = vsel %vm353_vm7, %v341_v41, %v352_v50  ;;  %v366_v57 = vmul.f32 %v609_v52, %v343_v43  ;;  %v350_v58 = vsel %vm348_vm6, %v349_v45, %v347_v53 }
  0x3e   : > { %v357_v59 = vsel %vm355_vm8, %v356_v48, %v354_v56  ;;  %v361_v60 = vsel %vm360_vm9, %v342_v42, %v359_v54 }
  0x3f   : > { %v364_v61 = vsel %vm362_vm10, %v363_v51, %v361_v60  ;;  %v368_v62 = vsel %vm367_vm11, %v343_v43, %v366_v57  ;;  %v385_v63 = vrot.slane %v357_v59, 7 }
  0x40   : > { %v371_v0 = vsel %vm369_vm12, %v370_v55, %v368_v62  ;;  %v388_v1 = vrot.slane %v364_v61, 6 }
  0x41   : > { %v387_v2 = vsel %vm386_vm13, %v385_v63, %v350_v58  ;;  %v391_v3 = vrot.slane %v371_v0, 5 }
  0x42   : > { %v390_v4 = vsel %vm389_vm14, %v388_v1, %v387_v2 }
  0x43   : > { %v393_v5 = vsel %vm392_vm15, %v391_v3, %v390_v4 }
  0x44   : > { %590 = vmatmul.mubr.msk.f32.vlgmr.msra.gmra.mxu0 %vm394_vm0, %v393_v5 }
 0x104   : > { %v463_v8 = vpop.f32.mrf.mxu0 }
 0x105   : > { %v464_v9 = vadd.f32 %v575_v6, %v463_v8 }
 0x106   : > { %v591_v10 = vpop.f32.mrf.mxu0 }
 0x107   : > { %610 = vtanh.f32 %v464_v9 }
 0x114   : > { %v611_v13 = vpop.eup %610 }
 0x115   : > { %v475_v17 = vmul.f32 %v611_v13, %v577_v12 }
 0x117   : > { %v477_v18 = vsel %vm476_vm1, %v475_v17, 0.0 }
 0x118   : > { %478 = vadd.xlane.f32.xlu0 %v477_v18 }
 0x1a1   : > { %v479_v20 = vpop.xlane.xlu0 %478 }
 0x1a2   : > { %v487_v21 = vadd.f32 %v578_v19, %v479_v20 }
 0x1a4   : > { %v488_v22 = vmul.f32 2.0, %v487_v21 }
 0x1a6   : > { %v490_v23 = vsel %vm489_vm2, %v488_v22, -inf }
 0x1a7   : > { %v491_v24 = vrot.slane %v490_v23, 4 }
 0x1a9   : > { %v492_v25 = vmax.f32 %v490_v23, %v491_v24 }
 0x1ab   : > { %v493_v7 = vrot.slane %v492_v25, 2 }
 0x1ad   : > { %v494_v14 = vmax.f32 %v492_v25, %v493_v7 }
 0x1af   : > { %v495_v11 = vrot.slane %v494_v14, 1 }
 0x1b1   : > { %v496_v15 = vmax.f32 %v494_v14, %v495_v11 }
 0x1b3   : > { %v497_v26 = vsub.f32 %v488_v22, %v496_v15 }
 0x1b5   : > { %v498_v27 = vmul.f32 1.442695, %v497_v26 }
 0x1b7   : > { %612 = vpow2.f32 %v498_v27 }
 0x1c4   : > { %v613_v16 = vpop.eup %612 }
 0x1c5   : > { %v500_v28 = vsel %vm489_vm2, %v613_v16, 0.0 }
 0x1c6   : > { %v501_v29 = vrot.slane %v500_v28, 4 }
 0x1c8   : > { %v502_v30 = vadd.f32 %v501_v29, %v500_v28 }
 0x1ca   : > { %v503_v31 = vrot.slane %v502_v30, 2 }
 0x1cc   : > { %v504_v32 = vadd.f32 %v503_v31, %v502_v30 }
 0x1ce   : > { %v505_v33 = vrot.slane %v504_v32, 1 }
 0x1d0   : > { %v506_v34 = vadd.f32 %v505_v33, %v504_v32 }
 0x1d2   : > { %614 = vrcp.f32 %v506_v34 }
 0x1df   : > { %v615_v35 = vpop.eup %614 }
 0x1e0   : > { %v508_v36 = vmul.f32 %v615_v35, %v613_v16 }
 0x1e2   : > { %509 = vst.msk [vmem:[%s224_s11] sm:$0xf] %vm489_vm2, %v508_v36 }
 0x1e3 PF: > { %s17_s20 = sadd.s32 1, %s622_s20  }
 0x1e4   : > { %p14_p4 = scmp.ge.s32.totalorder %s17_s20, 4  }
 0x1e6   :  { %16 = sbr.rel (!%p14_p4) target bundleno = 3 (0x3), region = 71 }

</bundles_post_ra>
